<compile_context>
chip_gen: v7x
topology: tpu7x:2x2x1
jax: 0.10.0
libtpu: 0.0.40
codegen_flags: <defaults>
</compile_context>

<pallas_src>
import functools

import jax
import jax.numpy as jnp
from jax.experimental import pallas as pl
from jax.experimental.pallas import tpu as pltpu


def _concat_elu_kernel(x_ref, o_ref, *, alpha):
    # x_ref: (tc, tl); o_ref: (2, tc, tl) with o[0] = elu(x), o[1] = elu(-x).
    x = x_ref[...].astype(jnp.float32)
    # Shared transcendental: exp(-|x|) equals exp(z) exactly on the branch
    # (z <= 0) where each half actually uses it, so one EUP exp serves both.
    neg_branch = alpha * (jnp.exp(-jnp.abs(x)) - 1.0)
    pos = jnp.where(x > 0, x, neg_branch)    # ELU(x)
    neg = jnp.where(x < 0, -x, neg_branch)   # ELU(-x)
    o_ref[0, :, :] = pos.astype(o_ref.dtype)
    o_ref[1, :, :] = neg.astype(o_ref.dtype)


def _pick_tile(dim, quantum, max_elems):
    """Tile extent along one axis.

    Returns the full dim when it fits the budget (full extent is always a
    legal block extent). Otherwise returns the largest multiple of `quantum`
    that fits, preferring an exact divisor of `dim` so there is no partial
    edge block; ragged dims fall back to a clamped multiple (edge block is
    handled by a cdiv grid) -- never an over-budget full dim.
    """
    if dim <= max_elems:
        return dim
    cap = max((max_elems // quantum) * quantum, quantum)
    if dim % quantum == 0:
        t = cap
        while dim % t != 0:
            t -= quantum
        return t
    return cap


def concat_elu(x, alpha: float = 1.0):
    """Pallas implementation of ConcatELU.forward for NCHW input."""
    N, C, H, W = x.shape
    hw = H * W
    L = C * hw
    itemsize = jnp.dtype(x.dtype).itemsize
    sublane_q = 8 * max(1, 4 // itemsize)

    if L % 128 == 0:
        # Lane-dense path: flatten (C, H, W) per batch and view it as rows of
        # 128 lanes. Every block is a contiguous (tc, 128) slab; every store is
        # an unmasked full-lane vst, independent of H*W alignment.
        D = 128
        R = L // D
    else:
        # Ragged fallback: keep (C, H*W); the lane tail is masked on store.
        # TODO(synk): pad H*W to a multiple of 128 upstream for full-rate stores.
        D = hw
        R = C
    x3 = x.reshape(N, R, D)

    # VMEM budget: explicit 48 MiB scoped limit (fits v5e/v6e/v7x), keep about
    # 40 MiB in flight. Per tile element: 6*itemsize bytes of double-buffered
    # pipeline traffic (2x input + 2x the 2x-sized output) plus ~16 bytes of
    # in-kernel f32 staging (x upcast, exp branch, pos, neg).
    vmem_limit_bytes = 48 * 1024 * 1024
    budget_bytes = 40 * 1024 * 1024
    max_tile_elems = max(sublane_q * 128, budget_bytes // (6 * itemsize + 16))

    if sublane_q * D <= max_tile_elems:
        # Full lane extent: each block is contiguous rows -> single-chunk DMAs.
        tl = D
        max_rows = max(sublane_q, max_tile_elems // max(tl, 1))
        tc = _pick_tile(R, sublane_q, max_rows)
    else:
        # A single group of rows already exceeds the budget: split lanes.
        tc = min(R, sublane_q)
        tl = _pick_tile(D, 128, max(128, max_tile_elems // max(tc, 1)))

    # v7x has 2 TensorCores per chip: make sure the (all-parallel) grid has at
    # least 2 steps so both cores get work on small activations.
    if N * pl.cdiv(R, tc) * pl.cdiv(D, tl) < 2:
        if R >= 2 * sublane_q:
            tc = sublane_q * (R // (2 * sublane_q))
        elif D >= 256:
            tl = 128 * max(1, (D // 128) // 2)

    grid = (N, pl.cdiv(R, tc), pl.cdiv(D, tl))

    cost = pl.CostEstimate(
        flops=8 * x.size,
        transcendentals=x.size,
        bytes_accessed=3 * x.size * itemsize,  # read x once, write 2x
    )

    out = pl.pallas_call(
        functools.partial(_concat_elu_kernel, alpha=float(alpha)),
        out_shape=jax.ShapeDtypeStruct((N, 2, R, D), x.dtype),
        grid=grid,
        in_specs=[
            pl.BlockSpec((None, tc, tl), lambda n, ci, li: (n, ci, li)),
        ],
        # Output is written directly in its final (N, 2, R, D) memory order.
        out_specs=pl.BlockSpec(
            (None, 2, tc, tl), lambda n, ci, li: (n, 0, ci, li)
        ),
        compiler_params=pltpu.CompilerParams(
            dimension_semantics=("parallel", "parallel", "parallel"),
            vmem_limit_bytes=vmem_limit_bytes,
        ),
        cost_estimate=cost,
    )(x3)

    # (N, 2, R, D) is byte-identical to (N, 2, C, H, W): pure reshape.
    return out.reshape(N, 2 * C, H, W)


if __name__ == "__main__":
    key = jax.random.PRNGKey(0)

    # Primary check: lane-dense path (C*H*W multiple of 128).
    x = jax.random.normal(key, (2, 4, 16, 16), dtype=jnp.float32)
    y = concat_elu(x, alpha=1.0)
    jax.block_until_ready(y)
    ref = jax.nn.elu(jnp.concatenate([x, -x], axis=1), 1.0)
    assert y.shape == (2, 8, 16, 16), y.shape
    assert y.dtype == x.dtype
    assert jnp.allclose(y, ref, atol=1e-5, rtol=1e-5)

    # Secondary check: ragged fallback path (C*H*W not a multiple of 128).
    x2 = jax.random.normal(jax.random.PRNGKey(1), (1, 3, 5, 5), dtype=jnp.float32)
    y2 = concat_elu(x2, alpha=1.0)
    jax.block_until_ready(y2)
    ref2 = jax.nn.elu(jnp.concatenate([x2, -x2], axis=1), 1.0)
    assert y2.shape == (1, 6, 5, 5), y2.shape
    assert jnp.allclose(y2, ref2, atol=1e-5, rtol=1e-5)

    print("KERNEL_OK")
</pallas_src>

<mosaic_0001>
module attributes {stable_mosaic.version = 11 : i64} {
  func.func @_concat_elu_kernel(%arg0: i32, %arg1: i32, %arg2: i32, %arg3: memref<1x8x128xf32, #tpu.memory_space<vmem>>, %arg4: memref<1x2x8x128xf32, #tpu.memory_space<vmem>>) attributes {dimension_semantics = [#tpu.dimension_semantics<parallel>, #tpu.dimension_semantics<parallel>, #tpu.dimension_semantics<parallel>], iteration_bounds = array<i64: 2, 1, 1>, scalar_prefetch = 0 : i64, scratch_operands = 0 : i64, tpu.core_type = #tpu.core_type<tc>, window_params = [{transform_indices = @transform_0, window_bounds = array<i64: 1, 8, 128>}, {transform_indices = @transform_1, window_bounds = array<i64: 1, 2, 8, 128>}]} {
    %c0 = arith.constant 0 : index
    %c0_0 = arith.constant 0 : index
    %c0_1 = arith.constant 0 : index
    %0 = vector.load %arg3[%c0, %c0_0, %c0_1] : memref<1x8x128xf32, #tpu.memory_space<vmem>>, vector<1x8x128xf32>
    %1 = vector.shape_cast %0 : vector<1x8x128xf32> to vector<8x128xf32>
    %2 = math.absf %1 : vector<8x128xf32>
    %cst = arith.constant 0.000000e+00 : f32
    %3 = vector.broadcast %cst : f32 to vector<8x128xf32>
    %4 = arith.subf %3, %2 : vector<8x128xf32>
    %5 = math.exp %4 : vector<8x128xf32>
    %cst_2 = arith.constant 1.000000e+00 : f32
    %6 = vector.broadcast %cst_2 : f32 to vector<8x128xf32>
    %7 = arith.subf %5, %6 : vector<8x128xf32>
    %cst_3 = arith.constant 1.000000e+00 : f32
    %8 = vector.broadcast %cst_3 : f32 to vector<8x128xf32>
    %9 = arith.mulf %8, %7 : vector<8x128xf32>
    %cst_4 = arith.constant 0.000000e+00 : f32
    %10 = vector.broadcast %cst_4 : f32 to vector<8x128xf32>
    %11 = arith.cmpf ogt, %1, %10 : vector<8x128xf32>
    %12 = arith.select %11, %1, %9 : vector<8x128xi1>, vector<8x128xf32>
    %cst_5 = arith.constant 0.000000e+00 : f32
    %13 = vector.broadcast %cst_5 : f32 to vector<8x128xf32>
    %14 = arith.cmpf olt, %1, %13 : vector<8x128xf32>
    %cst_6 = arith.constant 0.000000e+00 : f32
    %15 = vector.broadcast %cst_6 : f32 to vector<8x128xf32>
    %16 = arith.subf %15, %1 : vector<8x128xf32>
    %17 = arith.select %14, %16, %9 : vector<8x128xi1>, vector<8x128xf32>
    %c0_7 = arith.constant 0 : index
    %c0_8 = arith.constant 0 : index
    %c0_9 = arith.constant 0 : index
    %c0_10 = arith.constant 0 : index
    %18 = vector.load %arg4[%c0_7, %c0_8, %c0_9, %c0_10] : memref<1x2x8x128xf32, #tpu.memory_space<vmem>>, vector<1x1x8x128xf32>
    %19 = vector.shape_cast %18 : vector<1x1x8x128xf32> to vector<8x128xf32>
    %20 = vector.shape_cast %12 : vector<8x128xf32> to vector<1x1x8x128xf32>
    tpu.vector_store %arg4[%c0_7, %c0_8, %c0_9, %c0_10], %20 {strides = array<i32>} : memref<1x2x8x128xf32, #tpu.memory_space<vmem>>, vector<1x1x8x128xf32>,
    %c0_11 = arith.constant 0 : index
    %c1 = arith.constant 1 : index
    %c0_12 = arith.constant 0 : index
    %c0_13 = arith.constant 0 : index
    %21 = vector.load %arg4[%c0_11, %c1, %c0_12, %c0_13] : memref<1x2x8x128xf32, #tpu.memory_space<vmem>>, vector<1x1x8x128xf32>
    %22 = vector.shape_cast %21 : vector<1x1x8x128xf32> to vector<8x128xf32>
    %23 = vector.shape_cast %17 : vector<8x128xf32> to vector<1x1x8x128xf32>
    tpu.vector_store %arg4[%c0_11, %c1, %c0_12, %c0_13], %23 {strides = array<i32>} : memref<1x2x8x128xf32, #tpu.memory_space<vmem>>, vector<1x1x8x128xf32>,
    return
  }
  func.func @transform_0(%arg0: i32, %arg1: i32, %arg2: i32) -> (i32, i32, i32) {
    %c0_i32 = arith.constant 0 : i32
    return %arg0, %arg1, %arg2 : i32, i32, i32
  }
  func.func @transform_1(%arg0: i32, %arg1: i32, %arg2: i32) -> (i32, i32, i32, i32) {
    %c0_i32 = arith.constant 0 : i32
    %c0_i32_0 = arith.constant 0 : i32
    return %arg0, %c0_i32, %arg1, %arg2 : i32, i32, i32, i32
  }
}

</mosaic_0001>

<bundles_post_ra>
// kernel: tpu_custom_call.1
= control target key start
LH: loop header
LB: loop body
LE: loop exit
PB: predicated region body
PF: predicated region fallthrough
CT: control target
= control target key end

     0   :  { %6 = vsyncpa [#allocation3], 0  ;;  %s666_s0 = inlined_call_operand.hbm [shape: f32[2,8,128], index: 0, kind: input, shape index: {}]   ;;  %s667_s1 = inlined_call_operand.hbm [shape: f32[2,2,8,128], index: 1, kind: output, shape index: {}]  }
   0x1   :  { %8 = vsyncpa [#allocation3 + $0x1], 0 }
   0x2   :  { %9 = vsyncpa [#allocation4], 0 }
   0x3   :  { %11 = vsyncpa [#allocation4 + $0x1], 0  ;;  %s491_s6 = smov 0   ;;  %s493_s7 = smov 0  }
   0x4   :  { %s495_s8 = smov 0   ;;  %s497_s9 = smov 0  }
   0x5   :  { %s499_s10 = smov 0   ;;  %s501_s11 = smov 0  }
   0x6 LB: > { %s280_s12 = sadd.s32 4294967295, %s475_s11   ;;  %s281_s13 = sadd.s32 4294967294, %s475_s11   ;;  %s475_s11 = sphi %s501_s11, %s17_s11   ;;  %s471_s10 = sphi %s499_s10, %s683_s10   ;;  %s467_s9 = sphi %s497_s9, %s682_s9   ;;  %s463_s8 = sphi %s495_s8, %s681_s8   ;;  %s459_s7 = sphi %s493_s7, %s680_s7   ;;  %s455_s6 = sphi %s491_s6, %s679_s6  }
   0x7   : > { %s36_s14 = sadd.s32 1, %s471_s10  ;;  %s47_s15 = sadd.s32 1, %s463_s8 }
   0x8   : > { %p38_p0 = scmp.ge.s32.totalorder %s36_s14, 2  ;;  %p54_p1 = scmp.ne.s32.totalorder %s463_s8, %s459_s7 }
   0x9   : > { %p55_p2 = scmp.eq.s32.totalorder %s475_s11, 0  ;;  %p60_p3 = scmp.ne.s32.totalorder %s459_s7, %s455_s6 }
   0xa   : > { %s685_s14 = smov (%p38_p0, %s36_s14), 0  ;;  %p61_p5 = scmp.eq.s32.totalorder %s280_s12, 0 }
   0xb   : > { %p532_p4 = por %p55_p2, %p54_p1  ;;  %s40_s17 = ssub.s32 %s471_s10, %s685_s14 }
   0xc   : > { %p88_p6 = scmp.eq.s32.totalorder %s280_s12, 1  ;;  %p45_p7 = scmp.eq.s32.totalorder %s40_s17, 0 }
   0xd   : > { %p538_p8 = por %p61_p5, %p60_p3  ;;  %p94_p10 = scmp.eq.s32.totalorder %s281_s13, 1 }
   0xe   : > { %p542_p9 = por %p88_p6, %p54_p1  ;;  %p309_p13 = scmp.lt.s32.totalorder %s475_s11, 2 }
   0xf   : > { %s547_s20 = scalar_select %p45_p7, %s463_s8, %s47_s15  }
  0x10   : > { %s671_s19 = scalar_select %p542_p9, 1, 0 }
  0x11   : > { %p549_p11 = por %p94_p10, %p60_p3  ;;  %s114_s22 = sand.u32 1, %s463_s8  }
  0x12   : > { %s284_s23 = sshll.u32 %s114_s22, 3  ;;  %s285_s24 = sshll.u32 %s471_s10, 7 }
  0x13   : > { %s672_s21 = scalar_select %p549_p11, 1, 0 }
  0x14   : > { %s560_s27 = scalar_lea.hbm %s666_s0, %s285_s24  ;;  %s118_s28 = scalar_lea.vmem [#allocation2], %s284_s23 }
  0x15   : > { %s127_s29 = sshll.u32 %s118_s28, 4  ;;  %p566_p0 = pnand %p309_p13, %p532_p4  ;;  %s562_s29 = int_to_ptr.vmem [resolvable:$true] %s127_s29 }
  0x16   : > { %s115_s2 = scalar_lea.sflag [#allocation3], %s114_s22  ;;  %s363_s3 = scalar_lea.hbm %s560_s27, 128 }
  0x17   : > { %p364_p3 = scmp.ne.s32.totalorder %s560_s27, %s363_s3  ;;  %p365_p5 = pneg %p566_p0 }
  0x18   : > { %s368_s12 = scalar_lea.hbm %s666_s0, 256  ;;  %p369_p4 = scmp.lt.u32.totalorder %s560_s27, %s666_s0 }
  0x19   : > { %p366_p6 = pnand %p365_p5, %p364_p3  ;;  %p370_p10 = scmp.lt.u32.totalorder %s368_s12, %s363_s3 }
  0x1a   : > { %p372_p12 = scmp.lt.u32.totalorder %s363_s3, %s560_s27 }
  0x1b   : > { %p367_p7 = pneg %p366_p6  ;;  %p371_p13 = por %p370_p10, %p369_p4 }
  0x1d   : > { %p373_p1 = por %p372_p12, %p371_p13 }
  0x1f   : > { %p374_p2 = pnand %p373_p1, %p367_p7 }
  0x21   : > { %377 = shalt.err (!%p374_p2)
}
  0x22   : > { %s378_s16 = scalar_lea.vmem %s562_s29, 128  ;;  %s477_s17 = smov [#allocation2]  }
  0x23   : > { %p379_p3 = scmp.ne.s32.totalorder %s562_s29, %s378_s16  ;;  %s383_s22 = sshll.u32 %s477_s17, 4  ;;  %s384_s22 = int_to_ptr.vmem [resolvable:$false] %s383_s22 }
  0x24   : > { %s385_s23 = scalar_lea.vmem %s384_s22, 256  ;;  %p386_p9 = scmp.lt.s32.totalorder %s562_s29, %s384_s22 }
  0x25   : > { %p381_p6 = pnand %p379_p3, %p365_p5  ;;  %p387_p4 = scmp.lt.s32.totalorder %s385_s23, %s378_s16 }
  0x27   : > { %p382_p11 = pneg %p381_p6  ;;  %p388_p10 = por %p387_p4, %p386_p9 }
  0x29   : > { %p389_p12 = pnand %p388_p10, %p382_p11 }
  0x2b   : > { %392 = shalt.err (!%p389_p12)
}
  0x2c   : > { %304 = dma.hbm_to_vmem [thread:$0]  (!%p566_p0), %s560_s27, 128, %s562_s29, %s115_s2  }
  0x2d   : > { %p674_p1 = scmp.lt.s32.totalorder %s475_s11, 3  ;;  %p675_p2 = scmp.ge.s32.totalorder %s475_s11, 1 }
  0x2f   : > { %p133_p5 = pnand %p675_p2, %p674_p1 }
  0x30   : > { %s602_s24 = sand.u32 (!%p133_p5), 1, %s459_s7  }
  0x31   : > { %136 = sbr.rel (%p133_p5) target bundleno = 93 (0x5d), region = 24  ;;  %s287_s25 = sshll.u32 (!%p133_p5), %s602_s24, 3 }
  0x32   : > { %s139_s26 = scalar_lea.sflag (!%p133_p5), [#allocation3], %s602_s24  ;;  %s142_s28 = scalar_lea.vmem (!%p133_p5), [#allocation2], %s287_s25 }
  0x38   : > { %446 = dma.done.wait (%p538_p8), %s139_s26, 128  }
  0x39   : > { %448 = vsyncadd (%p538_p8), %s139_s26, 4294967168  ;;  %v161_v0 = vld [vmem:[%s142_s28] sm:$0xff]  ;;  %s288_s27 = sshll.u32 %s602_s24, 4  ;;  %s296_s2 = sshll.u32 %s467_s9, 8 }
  0x3a   : > { %v162_v1 = vand.u32 2147483647, %v161_v0  ;;  %s160_s29 = scalar_lea.vmem [#allocation5], %s288_s27  ;;  %v170_v4 = vsub.f32 0.0, %v161_v0  ;;  %vm167_vm0 = vcmp.gt.f32.partialorder %v161_v0, 0.0  ;;  %vm169_vm1 = vcmp.lt.f32.partialorder %v161_v0, 0.0  ;;  %s617_s4 = scalar_lea.hbm %s667_s1, %s296_s2 }
  0x3b   : > { %s191_s30 = sshll.u32 %s160_s29, 4  ;;  %s176_s9 = scalar_lea.sflag [#allocation4], %s602_s24  ;;  %s612_s30 = int_to_ptr.vmem [resolvable:$true] %s191_s30 }
  0x3c   : > { %v163_v2 = vsub.f32 0.0, %v162_v1  ;;  %s393_s5 = scalar_lea.vmem %s612_s30, 256  ;;  %p676_p9 = scmp.ne.s32.totalorder %s671_s19, 0 }
  0x3d   : > { %p394_p8 = scmp.ne.s32.totalorder %s612_s30, %s393_s5  ;;  %s478_s12 = smov [#allocation5]  }
  0x3e   : > { %v164_v3 = vmul.f32 1.442695, %v163_v2  ;;  %s397_s13 = sshll.u32 %s478_s12, 4  ;;  %s398_s13 = int_to_ptr.vmem [resolvable:$false] %s397_s13 }
  0x3f   : > { %p395_p11 = pnand %p394_p8, %p676_p9  ;;  %s399_s15 = scalar_lea.vmem %s398_s13, 512 }
  0x40   : > { %361 = vpow2.f32 %v164_v3  ;;  %p400_p7 = scmp.lt.s32.totalorder %s612_s30, %s398_s13  ;;  %p401_p13 = scmp.lt.s32.totalorder %s399_s15, %s393_s5 }
  0x41   : > { %p396_p0 = pneg %p395_p11 }
  0x42   : > { %p402_p3 = por %p401_p13, %p400_p7 }
  0x44   : > { %p403_p6 = pnand %p402_p3, %p396_p0 }
  0x4a   : > { %v362_v5 = vpop.eup %361 }
  0x4b   : > { %v289_v6 = vadd.f32 -1.0, %v362_v5 }
  0x4d   : > { %v168_v7 = vsel %vm167_vm0, %v161_v0, %v289_v6  ;;  %v171_v8 = vsel %vm169_vm1, %v170_v4, %v289_v6 }
  0x4e   : > { %172 = vst [vmem:[%s160_s29] sm:$0xff] %v168_v7  ;;  %290 = vst [vmem:[%s160_s29 + $0x8] sm:$0xff] %v171_v8 }
  0x4f   : > { %406 = shalt.err (!%p403_p6)
}
  0x50   : > { %s407_s16 = scalar_lea.hbm %s617_s4, 256  ;;  %s411_s23 = scalar_lea.hbm %s667_s1, 512 }
  0x51   : > { %p408_p4 = scmp.ne.s32.totalorder %s617_s4, %s407_s16  ;;  %p412_p1 = scmp.lt.u32.totalorder %s617_s4, %s667_s1 }
  0x52   : > { %p413_p2 = scmp.lt.u32.totalorder %s411_s23, %s407_s16  ;;  %p415_p8 = scmp.lt.u32.totalorder %s407_s16, %s617_s4 }
  0x53   : > { %p409_p10 = pnand %p408_p4, %p676_p9 }
  0x54   : > { %p414_p5 = por %p413_p2, %p412_p1 }
  0x55   : > { %p410_p12 = pneg %p409_p10 }
  0x56   : > { %p416_p11 = por %p415_p8, %p414_p5 }
  0x58   : > { %p417_p0 = pnand %p416_p11, %p410_p12 }
  0x5a   : > { %420 = shalt.err (!%p417_p0)
}
  0x5b   : > { %s479_s28 = smov 128   ;;  %s480_s27 = smov 8  }
  0x5c   : > { %299 = dma.vmem_to_hbm [thread:$0]  (%p676_p9), %s612_s30, 256, %s617_s4, %s176_s9, %s479_s28, %s479_s28, %s480_s27  }
  0x5d PF: > { %s206_s29 = sand.u32 1, %s455_s6   ;;  %p677_p7 = scmp.ne.s32.totalorder %s672_s21, 0 }
  0x5e   : > { %p678_p13 = scmp.ge.s32.totalorder %s475_s11, 2  ;;  %s207_s2 = scalar_lea.sflag [#allocation4], %s206_s29 }
  0x60   : > { %p306_p3 = pnand %p678_p13, %p677_p7 }
  0x62   : > { %450 = dma.done.wait (!%p306_p3), %s207_s2, 256  }
  0x63   : > { %452 = vsyncadd (!%p306_p3), %s207_s2, 4294967040  ;;  %s17_s11 = sadd.s32 1, %s475_s11   ;;  %s679_s6 = smov %s459_s7 }
  0x64   : > { %p14_p6 = scmp.ge.s32.totalorder %s17_s11, 4   ;;  %s680_s7 = smov %s463_s8 }
  0x65   : > { %s681_s8 = smov %s547_s20  ;;  %s682_s9 = smov %s471_s10 }
  0x66   : > { %s683_s10 = smov %s685_s14  ;;  %16 = sbr.rel (!%p14_p6) target bundleno = 6 (0x6), region = 70 }
  0x6d   :  { %212 = vsyncpa [#allocation3], 1 }
  0x6e   :  { %214 = vsyncpa [#allocation3 + $0x1], 1 }
  0x6f   :  { %215 = vsyncpa [#allocation4], 1 }
  0x70   :  { %217 = vsyncpa [#allocation4 + $0x1], 1 }

</bundles_post_ra>
